<compile_context>
chip_gen: v7x
topology: tpu7x:2x2x1
jax: 0.10.0
libtpu: 0.0.40
codegen_flags: <defaults>
</compile_context>

<pallas_src>
import functools

import jax
import jax.numpy as jnp
from jax.experimental import pallas as pl
from jax.experimental.pallas import tpu as pltpu


# ----------------------------------------------------------------------------
# Kernels
# ----------------------------------------------------------------------------
def _gcn_kernel_agg_first(adj_ref, h_ref, norm_ref, w_ref, b_ref, o_ref, acc_ref,
                          *, tk):
    """Aggregate in the (padded) input-feature space; apply W + b at finalize.

    grid = (row tiles i, reduction tiles k); k is the last, "arbitrary" axis.
      adj_ref  : (tm, tk) int8   -- 0/1 entries, widened to bf16 for the MXU
      h_ref    : resident (n_pad, fin_pad) bf16  OR  streamed (tk, fin_pad) bf16
      norm_ref : (tm, 1) f32 destination-side 1/sqrt(deg)
      w_ref    : (fin_pad, fout_pad) bf16 (VMEM resident)
      b_ref    : (1, fout_pad) f32 (VMEM resident)
      acc_ref  : (tm, fin_pad) f32 scratch accumulator
    """
    k = pl.program_id(1)

    if h_ref.shape[0] == tk:                       # streamed fallback / single k tile
        h_blk = h_ref[...]
    else:                                          # resident h: slice k-th row chunk
        start = pl.multiple_of(k * tk, tk)
        h_blk = h_ref[pl.ds(start, tk), :]

    contrib = jnp.dot(adj_ref[...].astype(jnp.bfloat16), h_blk,
                      preferred_element_type=jnp.float32)

    @pl.when(k == 0)
    def _first():
        acc_ref[...] = contrib                     # direct write: no zero-fill pass

    @pl.when(k > 0)
    def _accumulate():
        acc_ref[...] += contrib

    @pl.when(k == pl.num_programs(1) - 1)
    def _finalize():
        h2 = (acc_ref[...] * norm_ref[...]).astype(jnp.bfloat16)   # dst normalization
        out = jnp.dot(h2, w_ref[...], preferred_element_type=jnp.float32) + b_ref[...]
        o_ref[...] = out.astype(o_ref.dtype)


def _gcn_kernel_transform_first(adj_ref, h_ref, norm_ref, b_ref, o_ref, acc_ref,
                                *, tk):
    """Features already transformed by W (Fout < Fin); aggregate, scale, add bias."""
    k = pl.program_id(1)

    if h_ref.shape[0] == tk:
        h_blk = h_ref[...]
    else:
        start = pl.multiple_of(k * tk, tk)
        h_blk = h_ref[pl.ds(start, tk), :]

    contrib = jnp.dot(adj_ref[...].astype(jnp.bfloat16), h_blk,
                      preferred_element_type=jnp.float32)

    @pl.when(k == 0)
    def _first():
        acc_ref[...] = contrib

    @pl.when(k > 0)
    def _accumulate():
        acc_ref[...] += contrib

    @pl.when(k == pl.num_programs(1) - 1)
    def _finalize():
        o_ref[...] = (acc_ref[...] * norm_ref[...] + b_ref[...]).astype(o_ref.dtype)


# ----------------------------------------------------------------------------
# Wrapper helpers
# ----------------------------------------------------------------------------
def _round_up(x, m):
    return ((x + m - 1) // m) * m


def _pad2(arr, rows, cols, dtype):
    """Cast to dtype; only materialize a fresh zero-padded buffer if needed."""
    r, c = arr.shape
    arr = arr.astype(dtype)
    if r == rows and c == cols:
        return arr
    return jnp.zeros((rows, cols), dtype).at[:r, :c].set(arr)


def _vmem_budget_bytes():
    """Per-generation scoped-VMEM budget (v7x has only 64 MiB physical VMEM)."""
    try:
        kind = jax.devices()[0].device_kind.lower()
    except Exception:  # noqa: BLE001
        kind = ""
    if "v7" in kind or "7x" in kind:
        return 48 * 1024 * 1024
    return 96 * 1024 * 1024            # v5e / v6e: 128 MiB physical VMEM


def _row_tile(n_pad, tk):
    """Keep >=2 row tiles when possible so 'parallel' can shard over v7x's 2 TCs."""
    if n_pad // tk >= 2 or n_pad < 256:
        return tk
    cand = (n_pad // 2) // 128 * 128
    while cand >= 128:
        if n_pad % cand == 0:
            return cand
        cand -= 128
    return tk


# ----------------------------------------------------------------------------
# Wrapper
# ----------------------------------------------------------------------------
def gcn_layer(adj, features, weight, bias, *, max_tile=1024):
    """adj: [N, N] with adj[dst, src] = 1, features: [N, Fin],
    weight: [Fin, Fout] (= nn.Linear.weight.T), bias: [Fout] or [1, Fout]."""
    N, fin = features.shape
    fout = weight.shape[1]

    # ---- tile / padding geometry (pad N UP to a tile multiple) -------------
    tk = min(max_tile, _round_up(N, 128))
    n_pad = _round_up(N, tk)
    tm = _row_tile(n_pad, tk)
    fin_pad = _round_up(fin, 128)
    fout_pad = _round_up(fout, 128)

    # ---- cheap prep on the int8 adjacency (1 byte/elem read) ---------------
    adj_i8 = adj.astype(jnp.int8)                          # 0/1 values are exact
    degs = jnp.sum(adj_i8, axis=1, dtype=jnp.int32).astype(jnp.float32)[:, None]
    # torch.pow(degs, -0.5) is inf for isolated nodes; clamp to 0 instead
    # (identical whenever every node has an in-edge, as in the demo graph).
    norm = jnp.where(degs > 0, jax.lax.rsqrt(degs), 0.0)

    adj_p = _pad2(adj_i8, n_pad, n_pad, jnp.int8)
    norm_p = _pad2(norm, n_pad, 1, jnp.float32)
    b_p = _pad2(bias.reshape(1, -1), 1, fout_pad, jnp.float32)

    x = features.astype(jnp.float32) * norm                # src-side normalization

    agg_first = fout >= fin
    if agg_first:
        f_inner_pad = fin_pad
        h_src = _pad2(x, n_pad, fin_pad, jnp.bfloat16)
        w_p = _pad2(weight, fin_pad, fout_pad, jnp.bfloat16)
    else:
        f_inner_pad = fout_pad
        hw = jnp.dot(x, weight.astype(jnp.float32),
                     preferred_element_type=jnp.float32)   # transform first (Fout < Fin)
        h_src = _pad2(hw, n_pad, fout_pad, jnp.bfloat16)
        w_p = None

    # ---- per-generation VMEM budget & h residency decision -----------------
    budget = _vmem_budget_bytes()
    resident_bytes = (3 * tm * tk                          # int8 adj tiles (<=3 buffers)
                      + 2 * n_pad * f_inner_pad * 2        # resident bf16 h
                      + 2 * tm * 4                         # norm blocks
                      + 2 * fin_pad * fout_pad * 2         # W
                      + 2 * fout_pad * 4                   # bias
                      + 2 * tm * fout_pad * 4              # output blocks
                      + tm * f_inner_pad * 4)              # f32 accumulator
    resident_h = int(resident_bytes * 1.25) <= budget

    if resident_h:
        h_spec = pl.BlockSpec((n_pad, f_inner_pad), lambda i, k: (0, 0))
    else:
        # TODO(synk): graphs too large to hold h resident (mostly v7x) re-stream
        # the (tk, f_inner) chunk once per row tile instead.
        h_spec = pl.BlockSpec((tk, f_inner_pad), lambda i, k: (k, 0))

    grid = (n_pad // tm, n_pad // tk)
    compiler_params = pltpu.CompilerParams(
        dimension_semantics=("parallel", "arbitrary"),     # row tiles shard across TCs
        vmem_limit_bytes=budget,
    )

    flops = 2 * n_pad * n_pad * f_inner_pad
    if agg_first:
        flops += 2 * n_pad * fin_pad * fout_pad
    bytes_accessed = (n_pad * n_pad                        # int8 adjacency
                      + n_pad * f_inner_pad * 2            # bf16 h (single pass)
                      + fin_pad * fout_pad * 2             # bf16 W
                      + n_pad * 4 + fout_pad * 4           # norm + bias
                      + n_pad * fout_pad * 4)              # f32 output
    cost = pl.CostEstimate(flops=int(flops), transcendentals=0,
                           bytes_accessed=int(bytes_accessed))

    def _run(adj_spec):
        if agg_first:
            return pl.pallas_call(
                functools.partial(_gcn_kernel_agg_first, tk=tk),
                out_shape=jax.ShapeDtypeStruct((n_pad, fout_pad), jnp.float32),
                grid_spec=pltpu.PrefetchScalarGridSpec(
                    num_scalar_prefetch=0,
                    grid=grid,
                    in_specs=[
                        adj_spec,                                                # adj tile
                        h_spec,                                                  # src feats
                        pl.BlockSpec((tm, 1), lambda i, k: (i, 0)),              # dst norm
                        pl.BlockSpec((fin_pad, fout_pad), lambda i, k: (0, 0)),  # W resident
                        pl.BlockSpec((1, fout_pad), lambda i, k: (0, 0)),        # b resident
                    ],
                    out_specs=pl.BlockSpec((tm, fout_pad), lambda i, k: (i, 0)),
                    scratch_shapes=[pltpu.VMEM((tm, fin_pad), jnp.float32)],
                ),
                compiler_params=compiler_params,
                cost_estimate=cost,
            )(adj_p, h_src, norm_p, w_p, b_p)
        return pl.pallas_call(
            functools.partial(_gcn_kernel_transform_first, tk=tk),
            out_shape=jax.ShapeDtypeStruct((n_pad, fout_pad), jnp.float32),
            grid_spec=pltpu.PrefetchScalarGridSpec(
                num_scalar_prefetch=0,
                grid=grid,
                in_specs=[
                    adj_spec,
                    h_spec,
                    pl.BlockSpec((tm, 1), lambda i, k: (i, 0)),
                    pl.BlockSpec((1, fout_pad), lambda i, k: (0, 0)),
                ],
                out_specs=pl.BlockSpec((tm, fout_pad), lambda i, k: (i, 0)),
                scratch_shapes=[pltpu.VMEM((tm, fout_pad), jnp.float32)],
            ),
            compiler_params=compiler_params,
            cost_estimate=cost,
        )(adj_p, h_src, norm_p, b_p)

    # adj is the dominant HBM stream: prefer 3-deep buffering when supported,
    # downgrade to the default double-buffered spec otherwise.
    adj_specs = []
    try:
        adj_specs.append(
            pl.BlockSpec((tm, tk), lambda i, k: (i, k), pipeline_mode=pl.Buffered(3)))
    except Exception:  # noqa: BLE001 - pipeline_mode/Buffered unavailable
        pass
    adj_specs.append(pl.BlockSpec((tm, tk), lambda i, k: (i, k)))

    out_p, last_err = None, None
    for spec in adj_specs:
        try:
            out_p = _run(spec)
            break
        except Exception as err:  # noqa: BLE001 - retry with default buffering only
            last_err = err
    if out_p is None:
        raise last_err

    return out_p[:N, :fout]


# ----------------------------------------------------------------------------
# Demo / correctness check
# ----------------------------------------------------------------------------
if __name__ == "__main__":
    key = jax.random.PRNGKey(0)
    k_adj, k_x, k_w, k_b = jax.random.split(key, 4)

    N = 16        # number of graph nodes
    in_feats = 8
    out_feats = 32

    # Random directed graph with self-loops (ensures in_degree >= 1, finite norm).
    adj = jax.random.bernoulli(k_adj, p=0.3, shape=(N, N)).astype(jnp.float32)
    adj = jnp.maximum(adj, jnp.eye(N, dtype=jnp.float32))

    features = jax.random.normal(k_x, (N, in_feats), dtype=jnp.float32)

    # nn.Linear(in_feats, out_feats) init: U(-1/sqrt(in), 1/sqrt(in))
    bound = 1.0 / (in_feats ** 0.5)
    weight = jax.random.uniform(k_w, (in_feats, out_feats),
                                minval=-bound, maxval=bound, dtype=jnp.float32)
    bias = jax.random.uniform(k_b, (1, out_feats),
                              minval=-bound, maxval=bound, dtype=jnp.float32)

    out = gcn_layer(adj, features, weight, bias)
    jax.block_until_ready(out)

    # Pure-JAX f32 reference of the original module's math (torch.pow(degs, -0.5)).
    degs = jnp.sum(adj, axis=1, keepdims=True)
    norm_ref = jnp.power(degs, -0.5)
    ref = ((adj @ (features * norm_ref)) * norm_ref) @ weight + bias
    assert out.shape == (N, out_feats)
    # h / W travel through the MXU in bf16 (adjacency is exact int8->bf16), so
    # compare against the f32 reference at bf16-class tolerance.
    assert jnp.allclose(out, ref, atol=2e-2, rtol=2e-2), float(
        jnp.max(jnp.abs(out - ref)))

    print("KERNEL_OK")
</pallas_src>

<mosaic_0001>
module attributes {stable_mosaic.version = 11 : i64} {
  func.func @_gcn_kernel_agg_first(%arg0: i32, %arg1: i32, %arg2: memref<128x128xi8, #tpu.memory_space<vmem>>, %arg3: memref<128x128xbf16, #tpu.memory_space<vmem>>, %arg4: memref<128x1xf32, #tpu.memory_space<vmem>>, %arg5: memref<128x128xbf16, #tpu.memory_space<vmem>>, %arg6: memref<1x128xf32, #tpu.memory_space<vmem>>, %arg7: memref<128x128xf32, #tpu.memory_space<vmem>>, %arg8: memref<128x128xf32, #tpu.memory_space<vmem>>) attributes {dimension_semantics = [#tpu.dimension_semantics<parallel>, #tpu.dimension_semantics<arbitrary>], iteration_bounds = array<i64: 1, 1>, scalar_prefetch = 0 : i64, scratch_operands = 1 : i64, tpu.core_type = #tpu.core_type<tc>, window_params = [{transform_indices = @transform_0, window_bounds = array<i64: 128, 128>}, {pipeline_mode = #tpu.pipeline_mode<synchronous>, transform_indices = @transform_1, window_bounds = array<i64: 128, 128>}, {transform_indices = @transform_2, window_bounds = array<i64: 128, 1>}, {pipeline_mode = #tpu.pipeline_mode<synchronous>, transform_indices = @transform_3, window_bounds = array<i64: 128, 128>}, {pipeline_mode = #tpu.pipeline_mode<synchronous>, transform_indices = @transform_4, window_bounds = array<i64: 1, 128>}, {transform_indices = @transform_5, window_bounds = array<i64: 128, 128>}]} {
    %c0 = arith.constant 0 : index
    %c0_0 = arith.constant 0 : index
    %0 = vector.load %arg3[%c0, %c0_0] : memref<128x128xbf16, #tpu.memory_space<vmem>>, vector<128x128xbf16>
    %c0_1 = arith.constant 0 : index
    %c0_2 = arith.constant 0 : index
    %1 = vector.load %arg2[%c0_1, %c0_2] : memref<128x128xi8, #tpu.memory_space<vmem>>, vector<128x128xi8>
    %2 = arith.sitofp %1 : vector<128x128xi8> to vector<128x128xbf16>
    %cst = arith.constant dense<0.000000e+00> : vector<128x128xf32>
    %3 = tpu.matmul %2, %0, %cst {dimension_numbers = #tpu.dot_dimension_numbers<[1], [0], [0], [1], [0, 0, 1, 1], [], []>} : vector<128x128xbf16>, vector<128x128xbf16>, vector<128x128xf32> -> vector<128x128xf32>
    %c0_i32 = arith.constant 0 : i32
    %4 = arith.cmpi eq, %arg1, %c0_i32 : i32
    %5 = arith.extui %4 : i1 to i32
    %c0_i32_3 = arith.constant 0 : i32
    %6 = arith.cmpi ne, %5, %c0_i32_3 : i32
    scf.if %6 {
      %c0_8 = arith.constant 0 : index
      %c0_9 = arith.constant 0 : index
      %13 = vector.load %arg8[%c0_8, %c0_9] : memref<128x128xf32, #tpu.memory_space<vmem>>, vector<128x128xf32>
      tpu.vector_store %arg8[%c0_8, %c0_9], %3 {strides = array<i32>} : memref<128x128xf32, #tpu.memory_space<vmem>>, vector<128x128xf32>,
    } else {
    }
    %c0_i32_4 = arith.constant 0 : i32
    %7 = arith.cmpi sgt, %arg1, %c0_i32_4 : i32
    %8 = arith.extui %7 : i1 to i32
    %c0_i32_5 = arith.constant 0 : i32
    %9 = arith.cmpi ne, %8, %c0_i32_5 : i32
    scf.if %9 {
      %c0_8 = arith.constant 0 : index
      %c0_9 = arith.constant 0 : index
      %13 = vector.load %arg8[%c0_8, %c0_9] : memref<128x128xf32, #tpu.memory_space<vmem>>, vector<128x128xf32>
      %14 = arith.addf %13, %3 : vector<128x128xf32>
      %c0_10 = arith.constant 0 : index
      %c0_11 = arith.constant 0 : index
      %15 = vector.load %arg8[%c0_10, %c0_11] : memref<128x128xf32, #tpu.memory_space<vmem>>, vector<128x128xf32>
      tpu.vector_store %arg8[%c0_10, %c0_11], %14 {strides = array<i32>} : memref<128x128xf32, #tpu.memory_space<vmem>>, vector<128x128xf32>,
    } else {
    }
    %c0_i32_6 = arith.constant 0 : i32
    %10 = arith.cmpi eq, %arg1, %c0_i32_6 : i32
    %11 = arith.extui %10 : i1 to i32
    %c0_i32_7 = arith.constant 0 : i32
    %12 = arith.cmpi ne, %11, %c0_i32_7 : i32
    scf.if %12 {
      %c0_8 = arith.constant 0 : index
      %c0_9 = arith.constant 0 : index
      %13 = vector.load %arg8[%c0_8, %c0_9] : memref<128x128xf32, #tpu.memory_space<vmem>>, vector<128x128xf32>
      %c0_10 = arith.constant 0 : index
      %c0_11 = arith.constant 0 : index
      %14 = vector.load %arg4[%c0_10, %c0_11] : memref<128x1xf32, #tpu.memory_space<vmem>>, vector<128x1xf32>
      %15 = vector.broadcast %14 : vector<128x1xf32> to vector<128x128xf32>
      %16 = arith.mulf %13, %15 : vector<128x128xf32>
      %17 = arith.truncf %16 : vector<128x128xf32> to vector<128x128xbf16>
      %c0_12 = arith.constant 0 : index
      %c0_13 = arith.constant 0 : index
      %18 = vector.load %arg5[%c0_12, %c0_13] : memref<128x128xbf16, #tpu.memory_space<vmem>>, vector<128x128xbf16>
      %cst_14 = arith.constant dense<0.000000e+00> : vector<128x128xf32>
      %19 = tpu.matmul %17, %18, %cst_14 {dimension_numbers = #tpu.dot_dimension_numbers<[1], [0], [0], [1], [0, 0, 1, 1], [], []>} : vector<128x128xbf16>, vector<128x128xbf16>, vector<128x128xf32> -> vector<128x128xf32>
      %c0_15 = arith.constant 0 : index
      %c0_16 = arith.constant 0 : index
      %20 = vector.load %arg6[%c0_15, %c0_16] : memref<1x128xf32, #tpu.memory_space<vmem>>, vector<1x128xf32>
      %21 = vector.broadcast %20 : vector<1x128xf32> to vector<128x128xf32>
      %22 = arith.addf %19, %21 : vector<128x128xf32>
      %c0_17 = arith.constant 0 : index
      %c0_18 = arith.constant 0 : index
      %23 = vector.load %arg7[%c0_17, %c0_18] : memref<128x128xf32, #tpu.memory_space<vmem>>, vector<128x128xf32>
      tpu.vector_store %arg7[%c0_17, %c0_18], %22 {strides = array<i32>} : memref<128x128xf32, #tpu.memory_space<vmem>>, vector<128x128xf32>,
    } else {
    }
    return
  }
  func.func @transform_0(%arg0: i32, %arg1: i32) -> (i32, i32) {
    %c0_i32 = arith.constant 0 : i32
    return %arg0, %arg1 : i32, i32
  }
  func.func @transform_1(%arg0: i32, %arg1: i32) -> (i32, i32) {
    %c0_i32 = arith.constant 0 : i32
    %c0_i32_0 = arith.constant 0 : i32
    %c0_i32_1 = arith.constant 0 : i32
    return %c0_i32, %c0_i32_0 : i32, i32
  }
  func.func @transform_2(%arg0: i32, %arg1: i32) -> (i32, i32) {
    %c0_i32 = arith.constant 0 : i32
    %c0_i32_0 = arith.constant 0 : i32
    return %arg0, %c0_i32 : i32, i32
  }
  func.func @transform_3(%arg0: i32, %arg1: i32) -> (i32, i32) {
    %c0_i32 = arith.constant 0 : i32
    %c0_i32_0 = arith.constant 0 : i32
    %c0_i32_1 = arith.constant 0 : i32
    return %c0_i32, %c0_i32_0 : i32, i32
  }
  func.func @transform_4(%arg0: i32, %arg1: i32) -> (i32, i32) {
    %c0_i32 = arith.constant 0 : i32
    %c0_i32_0 = arith.constant 0 : i32
    %c0_i32_1 = arith.constant 0 : i32
    return %c0_i32, %c0_i32_0 : i32, i32
  }
  func.func @transform_5(%arg0: i32, %arg1: i32) -> (i32, i32) {
    %c0_i32 = arith.constant 0 : i32
    %c0_i32_0 = arith.constant 0 : i32
    return %arg0, %c0_i32 : i32, i32
  }
}

</mosaic_0001>

<bundles_post_ra>
// kernel: tpu_custom_call.1
= control target key start
LH: loop header
LB: loop body
LE: loop exit
PB: predicated region body
PF: predicated region fallthrough
CT: control target
= control target key end

     0   :  { %10 = vsyncpa [#allocation4], 0  ;;  %s1079_s0 = inlined_call_operand.hbm [shape: s8[128,128], index: 0, kind: input, shape index: {}]   ;;  %s1080_s1 = inlined_call_operand.hbm [shape: bf16[128,128], index: 1, kind: input, shape index: {}]   ;;  %s1081_s2 = inlined_call_operand.hbm [shape: f32[128,1], index: 2, kind: input, shape index: {}]   ;;  %s1082_s3 = inlined_call_operand.hbm [shape: bf16[128,128], index: 3, kind: input, shape index: {}]   ;;  %s1083_s4 = inlined_call_operand.hbm [shape: f32[1,128], index: 4, kind: input, shape index: {}]   ;;  %s1084_s5 = inlined_call_operand.hbm [shape: f32[128,128], index: 5, kind: output, shape index: {}]  }
   0x1   :  { %11 = vsyncpa [#allocation7], 0 }
   0x2   :  { %12 = vsyncpa [#allocation10], 0 }
   0x3   :  { %13 = vsyncpa [#allocation5], 0  ;;  %s957_s18 = smov [#allocation6]   ;;  %s817_s22 = scalar_lea.hbm %s1080_s1, 1024 }
   0x4   :  { %s31_s19 = sshll.u32 %s957_s18, 4  ;;  %p818_p0 = scmp.ne.s32.totalorder %s1080_s1, %s817_s22  ;;  %s32_s19 = int_to_ptr.vmem [resolvable:$true] %s31_s19 }
   0x5   :  { %p821_p1 = scmp.lt.u32.totalorder %s817_s22, %s1080_s1 }
   0x7   :  { %p823_p2 = pnand %p821_p1, %p818_p0 }
   0x9   :  { %826 = shalt.err (!%p823_p2)
}
   0xa   :  { %s827_s27 = scalar_lea.vmem %s32_s19, 1024  ;;  %p832_p4 = scmp.lt.s32.totalorder %s32_s19, %s32_s19 }
   0xb   :  { %p828_p3 = scmp.ne.s32.totalorder %s32_s19, %s827_s27  ;;  %p833_p5 = scmp.lt.s32.totalorder %s827_s27, %s827_s27 }
   0xd   :  { %p834_p6 = por %p833_p5, %p832_p4 }
   0xf   :  { %p835_p7 = pnand %p834_p6, %p828_p3 }
  0x11   :  { %838 = shalt.err (!%p835_p7)
}
  0x12   :  { %s958_s28 = smov 64   ;;  %s959_s29 = smov 4  }
  0x13   :  { %37 = dma.hbm_to_vmem [thread:$0]  %s1080_s1, 1024, %s32_s19, [#allocation7], %s958_s28, %s958_s28, %s959_s29  }
  0x14   :  { %s960_s7 = smov [#allocation9]   ;;  %s961_s9 = smov [#allocation3]  }
  0x15   :  { %s55_s8 = sshll.u32 %s960_s7, 4  ;;  %s19_s10 = sshll.u32 %s961_s9, 4  ;;  %s56_s8 = int_to_ptr.vmem [resolvable:$true] %s55_s8  ;;  %s20_s10 = int_to_ptr.vmem [resolvable:$true] %s19_s10 }
  0x16   :  { %s839_s13 = scalar_lea.hbm %s1082_s3, 1024 }
  0x17   :  { %p840_p8 = scmp.ne.s32.totalorder %s1082_s3, %s839_s13  ;;  %p843_p9 = scmp.lt.u32.totalorder %s839_s13, %s1082_s3 }
  0x19   :  { %p845_p10 = pnand %p843_p9, %p840_p8 }
  0x1b   :  { %848 = shalt.err (!%p845_p10)
}
  0x1c   :  { %s849_s1 = scalar_lea.vmem %s56_s8, 1024  ;;  %p854_p12 = scmp.lt.s32.totalorder %s56_s8, %s56_s8 }
  0x1d   :  { %p850_p11 = scmp.ne.s32.totalorder %s56_s8, %s849_s1  ;;  %p855_p13 = scmp.lt.s32.totalorder %s849_s1, %s849_s1 }
  0x1f   :  { %p856_p0 = por %p855_p13, %p854_p12 }
  0x21   :  { %p857_p1 = pnand %p856_p0, %p850_p11 }
  0x23   :  { %860 = shalt.err (!%p857_p1)
}
  0x24   :  { %61 = dma.hbm_to_vmem [thread:$0]  %s1082_s3, 1024, %s56_s8, [#allocation10], %s958_s28, %s958_s28, %s959_s29  }
  0x25   :  { %s861_s22 = scalar_lea.hbm %s1079_s0, 512 }
  0x26   :  { %p862_p2 = scmp.ne.s32.totalorder %s1079_s0, %s861_s22  ;;  %p865_p3 = scmp.lt.u32.totalorder %s861_s22, %s1079_s0 }
  0x28   :  { %p867_p4 = pnand %p865_p3, %p862_p2 }
  0x2a   :  { %870 = shalt.err (!%p867_p4)
}
  0x2b   :  { %s871_s27 = scalar_lea.vmem %s20_s10, 512  ;;  %p876_p6 = scmp.lt.s32.totalorder %s20_s10, %s20_s10 }
  0x2c   :  { %p872_p5 = scmp.ne.s32.totalorder %s20_s10, %s871_s27  ;;  %p877_p7 = scmp.lt.s32.totalorder %s871_s27, %s871_s27 }
  0x2e   :  { %p878_p8 = por %p877_p7, %p876_p6 }
  0x30   :  { %p879_p9 = pnand %p878_p8, %p872_p5 }
  0x32   :  { %882 = shalt.err (!%p879_p9)
}
  0x33   :  { %s962_s3 = smov 128   ;;  %s963_s28 = smov 8  }
  0x34   :  { %25 = dma.hbm_to_vmem [thread:$0]  %s1079_s0, 512, %s20_s10, [#allocation4], %s962_s3, %s962_s3, %s963_s28  }
  0x35   :  { %s964_s6 = smov [#allocation8]   ;;  %s965_s8 = smov [#allocation11]  }
  0x36   :  { %s43_s7 = sshll.u32 %s964_s6, 4  ;;  %s68_s9 = sshll.u32 %s965_s8, 4  ;;  %s44_s7 = int_to_ptr.vmem [resolvable:$true] %s43_s7  ;;  %s69_s9 = int_to_ptr.vmem [resolvable:$true] %s68_s9 }
  0x37   :  { %s883_s13 = scalar_lea.hbm %s1081_s2, 2048 }
  0x38   :  { %p884_p10 = scmp.ne.s32.totalorder %s1081_s2, %s883_s13  ;;  %p887_p11 = scmp.lt.u32.totalorder %s883_s13, %s1081_s2 }
  0x3a   :  { %p889_p12 = pnand %p887_p11, %p884_p10 }
  0x3c   :  { %892 = shalt.err (!%p889_p12)
}
  0x3d   :  { %s893_s0 = scalar_lea.vmem %s44_s7, 2048  ;;  %p898_p0 = scmp.lt.s32.totalorder %s44_s7, %s44_s7 }
  0x3e   :  { %p894_p13 = scmp.ne.s32.totalorder %s44_s7, %s893_s0  ;;  %p899_p1 = scmp.lt.s32.totalorder %s893_s0, %s893_s0 }
  0x40   :  { %p900_p2 = por %p899_p1, %p898_p0 }
  0x42   :  { %p901_p3 = pnand %p900_p2, %p894_p13 }
  0x44   :  { %904 = shalt.err (!%p901_p3)
}
  0x45   :  { %49 = dma.hbm_to_vmem [thread:$0]  %s1081_s2, 2048, %s44_s7, [#allocation7], %s962_s3, %s962_s3, %s963_s28  }
  0x46   :  { %s905_s20 = scalar_lea.hbm %s1083_s4, 16 }
  0x47   :  { %p906_p4 = scmp.ne.s32.totalorder %s1083_s4, %s905_s20  ;;  %p909_p5 = scmp.lt.u32.totalorder %s905_s20, %s1083_s4 }
  0x49   :  { %p911_p6 = pnand %p909_p5, %p906_p4 }
  0x4b   :  { %914 = shalt.err (!%p911_p6)
}
  0x4c   :  { %s915_s25 = scalar_lea.vmem %s69_s9, 16  ;;  %s919_s26 = scalar_lea.vmem %s69_s9, 32 }
  0x4d   :  { %p916_p7 = scmp.ne.s32.totalorder %s69_s9, %s915_s25  ;;  %p920_p8 = scmp.lt.s32.totalorder %s69_s9, %s69_s9 }
  0x4e   :  { %p921_p9 = scmp.lt.s32.totalorder %s919_s26, %s915_s25 }
  0x50   :  { %p922_p10 = por %p921_p9, %p920_p8 }
  0x52   :  { %p923_p11 = pnand %p922_p10, %p916_p7 }
  0x54   :  { %926 = shalt.err (!%p923_p11)
}
  0x55   :  { %71 = dma.hbm_to_vmem [thread:$0]  %s1083_s4, 16, %s69_s9, [#allocation10]  }
  0x56   :  { %949 = dma.done.wait [#allocation4], 512  }
  0x57   :  { %950 = vsyncadd [#allocation4], 4294966784 }
  0x58   :  { %951 = dma.done.wait [#allocation7], 3072  }
  0x59   :  { %952 = vsyncadd [#allocation7], 4294964224 }
  0x5a   :  { %953 = dma.done.wait [#allocation10], 1040  }
  0x5b   :  { %954 = vsyncadd [#allocation10], 4294966256  ;;  %v966_v0 = vmov 0   ;;  %v801_v1 = vld [vmem:[#allocation6] sm:$0xff]   ;;  %v802_v2 = vld [vmem:[#allocation6 + $0x8] sm:$0xff]   ;;  %s967_s4 = smov [#allocation12]  }
  0x5c   :  { %799 = vset.pattern.permute.xlu0 %v966_v0  ;;  %800 = vset.pattern.permute.xlu1 %v966_v0  ;;  %v803_v3 = vld [vmem:[#allocation6 + $0x10] sm:$0xff]   ;;  %v804_v4 = vld [vmem:[#allocation6 + $0x18] sm:$0xff]   ;;  %v104_v5 = vld [vmem:[#allocation3] sm:$0xff]  ;;  %s661_s29 = sshll.u32 %s967_s4, 4  ;;  %s662_s29 = int_to_ptr.vmem [resolvable:$true] %s661_s29 }
  0x5d   :  { %724 = vmatprep.subr.bf16.mxu0 %v801_v1  ;;  %v108_v6 = vunpack.c.l.s8.bf16 %v104_v5  ;;  %v352_v7 = vld [vmem:[#allocation8] sm:$0xff]  ;;  %v354_v8 = vld [vmem:[#allocation8 + $0x10] sm:$0xff]  ;;  %v353_v9 = vld [vmem:[#allocation8 + $0x8] sm:$0xff]  ;;  %v109_v29 = vunpack.c.h.s8.bf16 %v104_v5  ;;  %s927_s30 = scalar_lea.vmem %s662_s29, 2048  ;;  %p932_p13 = scmp.lt.s32.totalorder %s662_s29, %s662_s29 }
  0x5e   :  { %725 = vmatpush3.bf16.msra.mxu0 %v801_v1  ;;  %370 = vperm.xlu0 %799, %v352_v7   ;;  %v355_v10 = vld [vmem:[#allocation8 + $0x18] sm:$0xff]  ;;  %v805_v11 = vld [vmem:[#allocation6 + $0x20] sm:$0xff]   ;;  %v806_v12 = vld [vmem:[#allocation6 + $0x28] sm:$0xff]   ;;  %p928_p12 = scmp.ne.s32.totalorder %s662_s29, %s927_s30  ;;  %p933_p0 = scmp.lt.s32.totalorder %s927_s30, %s927_s30 }
  0x5f   :  { %726 = vmatprep.subr.bf16.mxu0 %v802_v2  ;;  %380 = vperm.xlu1 %800, %v354_v8   ;;  %v356_v13 = vld [vmem:[#allocation8 + $0x20] sm:$0xff]  ;;  %v357_v14 = vld [vmem:[#allocation8 + $0x28] sm:$0xff]  ;;  %v358_v16 = vld [vmem:[#allocation8 + $0x30] sm:$0xff] }
  0x60   :  { %740 = vmatprep.mubr.bf16.mxu0 %v108_v6  ;;  %v809_v15 = vld [vmem:[#allocation9] sm:$0xff]   ;;  %v359_v17 = vld [vmem:[#allocation8 + $0x38] sm:$0xff]  ;;  %v810_v18 = vld [vmem:[#allocation9 + $0x8] sm:$0xff]   ;;  %p934_p1 = por %p933_p0, %p932_p13 }
  0x61   :  { %756 = vmatprep.subr.bf16.mxu1 %v809_v15  ;;  %v807_v19 = vld [vmem:[#allocation6 + $0x30] sm:$0xff]   ;;  %v360_v21 = vld [vmem:[#allocation8 + $0x40] sm:$0xff]  ;;  %v361_v22 = vld [vmem:[#allocation8 + $0x48] sm:$0xff] }
  0x62   :  { %727 = vmatpush3.bf16.msra.mxu0 %v802_v2  ;;  %375 = vperm.xlu0 %799, %v353_v9   ;;  %v811_v20 = vld [vmem:[#allocation9 + $0x10] sm:$0xff]   ;;  %v808_v23 = vld [vmem:[#allocation6 + $0x38] sm:$0xff]   ;;  %v105_v27 = vld [vmem:[#allocation3 + $0x8] sm:$0xff]  ;;  %p935_p2 = pnand %p934_p1, %p928_p12 }
  0x63   :  { %728 = vmatprep.subr.bf16.mxu0 %v803_v3  ;;  %385 = vperm.xlu1 %800, %v355_v10   ;;  %v812_v24 = vld [vmem:[#allocation9 + $0x18] sm:$0xff]   ;;  %v362_v25 = vld [vmem:[#allocation8 + $0x50] sm:$0xff]  ;;  %v813_v28 = vld [vmem:[#allocation9 + $0x20] sm:$0xff]   ;;  %v110_v30 = vunpack.c.l.s8.bf16 %v105_v27  ;;  %v111_v37 = vunpack.c.h.s8.bf16 %v105_v27 }
  0x64   :  { %757 = vmatpush3.bf16.msra.mxu1 %v809_v15  ;;  %v363_v26 = vld [vmem:[#allocation8 + $0x58] sm:$0xff]  ;;  %v364_v31 = vld [vmem:[#allocation8 + $0x60] sm:$0xff]  ;;  %v365_v32 = vld [vmem:[#allocation8 + $0x68] sm:$0xff] }
  0x65   :  { %758 = vmatprep.subr.bf16.mxu1 %v810_v18  ;;  %v814_v33 = vld [vmem:[#allocation9 + $0x28] sm:$0xff]   ;;  %v366_v34 = vld [vmem:[#allocation8 + $0x70] sm:$0xff]  ;;  %v367_v36 = vld [vmem:[#allocation8 + $0x78] sm:$0xff] }
  0x66   :  { %729 = vmatpush3.bf16.msra.mxu0 %v803_v3  ;;  %390 = vperm.xlu0 %799, %v356_v13   ;;  %v106_v35 = vld [vmem:[#allocation3 + $0x10] sm:$0xff]  ;;  %v107_v39 = vld [vmem:[#allocation3 + $0x18] sm:$0xff] }
  0x67   :  { %730 = vmatprep.subr.bf16.mxu0 %v804_v4  ;;  %395 = vperm.xlu1 %800, %v357_v14   ;;  %v112_v38 = vunpack.c.l.s8.bf16 %v106_v35  ;;  %v113_v40 = vunpack.c.h.s8.bf16 %v106_v35  ;;  %v114_v41 = vunpack.c.l.s8.bf16 %v107_v39  ;;  %v115_v42 = vunpack.c.h.s8.bf16 %v107_v39  ;;  %v815_v43 = vld [vmem:[#allocation9 + $0x30] sm:$0xff]   ;;  %v816_v44 = vld [vmem:[#allocation9 + $0x38] sm:$0xff]  }
  0x68   :  { %759 = vmatpush3.bf16.msra.mxu1 %v810_v18 }
  0x69   :  { %760 = vmatprep.subr.bf16.mxu1 %v811_v20 }
  0x6a   :  { %731 = vmatpush3.bf16.msra.mxu0 %v804_v4  ;;  %400 = vperm.xlu0 %799, %v358_v16  }
  0x6b   :  { %732 = vmatprep.subr.bf16.mxu0 %v805_v11  ;;  %405 = vperm.xlu1 %800, %v359_v17  }
  0x6c   :  { %761 = vmatpush3.bf16.msra.mxu1 %v811_v20 }
  0x6d   :  { %762 = vmatprep.subr.bf16.mxu1 %v812_v24 }
  0x6e   :  { %733 = vmatpush3.bf16.msra.mxu0 %v805_v11  ;;  %410 = vperm.xlu0 %799, %v360_v21  }
  0x6f   :  { %734 = vmatprep.subr.bf16.mxu0 %v806_v12  ;;  %415 = vperm.xlu1 %800, %v361_v22  }
  0x70   :  { %763 = vmatpush3.bf16.msra.mxu1 %v812_v24 }
  0x71   :  { %764 = vmatprep.subr.bf16.mxu1 %v813_v28 }
  0x72   :  { %735 = vmatpush3.bf16.msra.mxu0 %v806_v12  ;;  %420 = vperm.xlu0 %799, %v362_v25  }
  0x73   :  { %736 = vmatprep.subr.bf16.mxu0 %v807_v19  ;;  %425 = vperm.xlu1 %800, %v363_v26  }
  0x74   :  { %765 = vmatpush3.bf16.msra.mxu1 %v813_v28 }
  0x75   :  { %766 = vmatprep.subr.bf16.mxu1 %v814_v33 }
  0x76   :  { %737 = vmatpush3.bf16.msra.mxu0 %v807_v19  ;;  %430 = vperm.xlu0 %799, %v364_v31  }
  0x77   :  { %738 = vmatprep.subr.bf16.mxu0 %v808_v23  ;;  %435 = vperm.xlu1 %800, %v365_v32  }
  0x78   :  { %767 = vmatpush3.bf16.msra.mxu1 %v814_v33 }
  0x79   :  { %768 = vmatprep.subr.bf16.mxu1 %v815_v43 }
  0x7a   :  { %739 = vmatpush3.bf16.msra.mxu0 %v808_v23  ;;  %440 = vperm.xlu0 %799, %v366_v34  }
  0x7b   :  { %445 = vperm.xlu1 %800, %v367_v36  }
  0x7c   :  { %769 = vmatpush3.bf16.msra.mxu1 %v815_v43 }
  0x7d   :  { %741 = vmatmul.mubr.bf16.vlgmr.msra.gmra.mrb[0].mxu0 %v109_v29  ;;  %770 = vmatprep.subr.bf16.mxu1 %v816_v44 }
  0x7e   :  { %744 = vmatprep.mubr.bf16.mxu0 %v110_v30 }
  0x80   :  { %771 = vmatpush3.bf16.msra.mxu1 %v816_v44 }
  0x85   :  { %745 = vmatmul.mubr.bf16.gmra.mrb[4].mxu0 %v111_v37  ;;  %v683_v37 = vld [vmem:[#allocation11] ss:$0 sm:$0xff] }
  0x86   :  { %748 = vmatprep.mubr.bf16.mxu0 %v112_v38 }
  0x8d   :  { %749 = vmatmul.mubr.bf16.gmra.mrb[8].mxu0 %v113_v40 }
  0x8e   :  { %752 = vmatprep.mubr.bf16.mxu0 %v114_v41 }
  0x95   :  { %753 = vmatmul.mubr.bf16.gmra.mrb[12].mxu0 %v115_v42 }
  0xdd   :  { %v371_v45 = vpop.permute.xlu0 %370 }
  0xde   :  { %v381_v46 = vpop.permute.xlu1 %380 }
  0xe1   :  { %v376_v47 = vpop.permute.xlu0 %375 }
  0xe2   :  { %v386_v48 = vpop.permute.xlu1 %385 }
  0xe5   :  { %v391_v49 = vpop.permute.xlu0 %390 }
  0xe6   :  { %v396_v50 = vpop.permute.xlu1 %395 }
  0xe9   :  { %v401_v52 = vpop.permute.xlu0 %400 }
  0xea   :  { %v406_v54 = vpop.permute.xlu1 %405 }
  0xed   :  { %v411_v63 = vpop.permute.xlu0 %410 }
  0xee   :  { %v416_v0 = vpop.permute.xlu1 %415 }
  0xf1   :  { %v421_v9 = vpop.permute.xlu0 %420 }
  0xf2   :  { %v426_v11 = vpop.permute.xlu1 %425 }
  0xf5   :  { %v431_v16 = vpop.permute.xlu0 %430 }
  0xf6   :  { %v436_v20 = vpop.permute.xlu1 %435 }
  0xf9   :  { %v441_v26 = vpop.permute.xlu0 %440 }
  0xfa   :  { %v446_v28 = vpop.permute.xlu1 %445 }
 0x150   :  { %v742_v51 = vpop.f32.mrb[0].mxu0 }
 0x151   :  { %v198_v53 = vpop.f32.mrb[1].mxu0  ;;  %v450_v56 = vmul.f32 %v742_v51, %v381_v46 }
 0x152   :  { %v743_v55 = vpop.f32.mrb[2].mxu0  ;;  %v448_v59 = vmul.f32 %v371_v45, %v198_v53 }
 0x153   :  { %v451_v57 = vmul.f32 %v743_v55, %v386_v48  ;;  %v201_v58 = vpop.f32.mrb[3].mxu0 }
 0x154   :  { %v449_v60 = vmul.f32 %v376_v47, %v201_v58 }
 0x155   :  { %v465_v61 = vpack.c.bf16 %v451_v57, %v450_v56 }
 0x156   :  { %v464_v62 = vpack.c.bf16 %v449_v60, %v448_v59 }
 0x158   :  { %v746_v1 = vpop.f32.mrb[4].mxu0  ;;  %772 = vmatprep.mubr.bf16.mxu1 %v464_v62 }
 0x159   :  { %v214_v2 = vpop.f32.mrb[5].mxu0  ;;  %773 = vmatmul.mubr.bf16.vlgmr.msra.gmra.mrb[0].mxu1 %v465_v61  ;;  %v454_v4 = vmul.f32 %v746_v1, %v401_v52 }
 0x15a   :  { %v747_v3 = vpop.f32.mrb[6].mxu0  ;;  %v452_v7 = vmul.f32 %v391_v49, %v214_v2 }
 0x15b   :  { %v455_v5 = vmul.f32 %v747_v3, %v406_v54  ;;  %v217_v6 = vpop.f32.mrb[7].mxu0 }
 0x15c   :  { %v453_v8 = vmul.f32 %v396_v50, %v217_v6 }
 0x15d   :  { %v467_v10 = vpack.c.bf16 %v455_v5, %v454_v4 }
 0x15e   :  { %v466_v12 = vpack.c.bf16 %v453_v8, %v452_v7 }
 0x160   :  { %v750_v13 = vpop.f32.mrb[8].mxu0  ;;  %776 = vmatprep.mubr.bf16.mxu1 %v466_v12 }
 0x161   :  { %v230_v14 = vpop.f32.mrb[9].mxu0  ;;  %777 = vmatmul.mubr.bf16.gmra.mrb[4].mxu1 %v467_v10  ;;  %v458_v17 = vmul.f32 %v750_v13, %v421_v9 }
 0x162   :  { %v751_v15 = vpop.f32.mrb[10].mxu0  ;;  %v456_v21 = vmul.f32 %v411_v63, %v230_v14 }
 0x163   :  { %v459_v18 = vmul.f32 %v751_v15, %v426_v11  ;;  %v233_v19 = vpop.f32.mrb[11].mxu0 }
 0x164   :  { %v457_v22 = vmul.f32 %v416_v0, %v233_v19 }
 0x165   :  { %v469_v23 = vpack.c.bf16 %v459_v18, %v458_v17 }
 0x166   :  { %v468_v24 = vpack.c.bf16 %v457_v22, %v456_v21 }
 0x168   :  { %v754_v25 = vpop.f32.mrb[12].mxu0  ;;  %780 = vmatprep.mubr.bf16.mxu1 %v468_v24 }
 0x169   :  { %v246_v27 = vpop.f32.mrb[13].mxu0  ;;  %781 = vmatmul.mubr.bf16.gmra.mrb[8].mxu1 %v469_v23  ;;  %v462_v30 = vmul.f32 %v754_v25, %v441_v26 }
 0x16a   :  { %v755_v29 = vpop.f32.mrb[14].mxu0  ;;  %v460_v33 = vmul.f32 %v431_v16, %v246_v27 }
 0x16b   :  { %v463_v31 = vmul.f32 %v755_v29, %v446_v28  ;;  %v249_v32 = vpop.f32.mrb[15].mxu0 }
 0x16c   :  { %v461_v34 = vmul.f32 %v436_v20, %v249_v32 }
 0x16d   :  { %v471_v35 = vpack.c.bf16 %v463_v31, %v462_v30 }
 0x16e   :  { %v470_v36 = vpack.c.bf16 %v461_v34, %v460_v33 }
 0x170   :  { %784 = vmatprep.mubr.bf16.mxu1 %v470_v36 }
 0x171   :  { %785 = vmatmul.mubr.bf16.gmra.mrb[12].mxu1 %v471_v35 }
 0x22c   :  { %v774_v38 = vpop.f32.mrb[0].mxu1 }
 0x22d   :  { %v586_v39 = vadd.f32 %v774_v38, %v683_v37  ;;  %v577_v40 = vpop.f32.mrb[1].mxu1 }
 0x22e   :  { %v578_v41 = vadd.f32 %v683_v37, %v577_v40  ;;  %v775_v42 = vpop.f32.mrb[2].mxu1 }
 0x22f   :  { %642 = vst [vmem:[#allocation12 + $0x10] sm:$0xff] %v586_v39  ;;  %v589_v43 = vadd.f32 %v775_v42, %v683_v37  ;;  %v580_v44 = vpop.f32.mrb[3].mxu1 }
 0x230   :  { %640 = vst [vmem:[#allocation12] sm:$0xff] %v578_v41  ;;  %v581_v45 = vadd.f32 %v683_v37, %v580_v44 }
 0x231   :  { %643 = vst [vmem:[#allocation12 + $0x18] sm:$0xff] %v589_v43 }
 0x232   :  { %641 = vst [vmem:[#allocation12 + $0x8] sm:$0xff] %v581_v45 }
 0x234   :  { %v778_v46 = vpop.f32.mrb[4].mxu1 }
 0x235   :  { %v602_v47 = vadd.f32 %v778_v46, %v683_v37  ;;  %v593_v48 = vpop.f32.mrb[5].mxu1 }
 0x236   :  { %v594_v49 = vadd.f32 %v683_v37, %v593_v48  ;;  %v779_v50 = vpop.f32.mrb[6].mxu1 }
 0x237   :  { %646 = vst [vmem:[#allocation12 + $0x30] sm:$0xff] %v602_v47  ;;  %v605_v51 = vadd.f32 %v779_v50, %v683_v37  ;;  %v596_v52 = vpop.f32.mrb[7].mxu1 }
 0x238   :  { %644 = vst [vmem:[#allocation12 + $0x20] sm:$0xff] %v594_v49  ;;  %v597_v53 = vadd.f32 %v683_v37, %v596_v52 }
 0x239   :  { %647 = vst [vmem:[#allocation12 + $0x38] sm:$0xff] %v605_v51 }
 0x23a   :  { %645 = vst [vmem:[#allocation12 + $0x28] sm:$0xff] %v597_v53 }
 0x23c   :  { %v782_v54 = vpop.f32.mrb[8].mxu1 }
 0x23d   :  { %v618_v55 = vadd.f32 %v782_v54, %v683_v37  ;;  %v609_v56 = vpop.f32.mrb[9].mxu1 }
 0x23e   :  { %v610_v57 = vadd.f32 %v683_v37, %v609_v56  ;;  %v783_v58 = vpop.f32.mrb[10].mxu1 }
 0x23f   :  { %650 = vst [vmem:[#allocation12 + $0x50] sm:$0xff] %v618_v55  ;;  %v621_v59 = vadd.f32 %v783_v58, %v683_v37  ;;  %v612_v60 = vpop.f32.mrb[11].mxu1 }
 0x240   :  { %648 = vst [vmem:[#allocation12 + $0x40] sm:$0xff] %v610_v57  ;;  %v613_v61 = vadd.f32 %v683_v37, %v612_v60 }
 0x241   :  { %651 = vst [vmem:[#allocation12 + $0x58] sm:$0xff] %v621_v59 }
 0x242   :  { %649 = vst [vmem:[#allocation12 + $0x48] sm:$0xff] %v613_v61 }
 0x244   :  { %v786_v62 = vpop.f32.mrb[12].mxu1 }
 0x245   :  { %v634_v63 = vadd.f32 %v786_v62, %v683_v37  ;;  %v625_v0 = vpop.f32.mrb[13].mxu1 }
 0x246   :  { %v626_v1 = vadd.f32 %v683_v37, %v625_v0  ;;  %v787_v2 = vpop.f32.mrb[14].mxu1 }
 0x247   :  { %654 = vst [vmem:[#allocation12 + $0x70] sm:$0xff] %v634_v63  ;;  %v637_v3 = vadd.f32 %v787_v2, %v683_v37  ;;  %v628_v4 = vpop.f32.mrb[15].mxu1 }
 0x248   :  { %652 = vst [vmem:[#allocation12 + $0x60] sm:$0xff] %v626_v1  ;;  %v629_v5 = vadd.f32 %v683_v37, %v628_v4 }
 0x249   :  { %655 = vst [vmem:[#allocation12 + $0x78] sm:$0xff] %v637_v3 }
 0x24a   :  { %653 = vst [vmem:[#allocation12 + $0x68] sm:$0xff] %v629_v5 }
 0x24b   :  { %938 = shalt.err (!%p935_p2)
}
 0x24c   :  { %s939_s8 = scalar_lea.hbm %s1084_s5, 2048 }
 0x24d   :  { %p940_p3 = scmp.ne.s32.totalorder %s1084_s5, %s939_s8  ;;  %p943_p4 = scmp.lt.u32.totalorder %s939_s8, %s1084_s5 }
 0x24f   :  { %p945_p5 = pnand %p943_p4, %p940_p3 }
 0x251   :  { %948 = shalt.err (!%p945_p5)
}
 0x252   :  { %667 = dma.vmem_to_hbm [thread:$0]  %s662_s29, 2048, %s1084_s5, [#allocation5], %s962_s3, %s962_s3, %s963_s28  }
 0x253   :  { %955 = dma.done.wait [#allocation5], 2048  }
 0x254   :  { %956 = vsyncadd [#allocation5], 4294965248 }
 0x255   :  { %671 = vsyncpa [#allocation4], 1 }
 0x256   :  { %672 = vsyncpa [#allocation7], 1 }
 0x257   :  { %673 = vsyncpa [#allocation10], 1 }
 0x258   :  { %674 = vsyncpa [#allocation5], 1 }

</bundles_post_ra>
